<compile_context>
chip_gen: v5e
topology: v5e:2x2
jax: 0.10.0
libtpu: 0.0.40
codegen_flags: <defaults>
</compile_context>

<pallas_src>
import functools

import jax
import jax.numpy as jnp
from jax import lax
from jax.experimental import pallas as pl
from jax.experimental.pallas import tpu as pltpu


# --------------------------- shared epilogue --------------------------------

def _topk_epilogue(logits, idx_ref, wt_ref, *, top_k, n_experts, norm_topk_prob):
    """softmax + top-k + renorm on a (tm, e_pad) f32 logits tile.

    Writes lane-dense (tm, 128) outputs: lanes [0, top_k) hold the selected
    expert ids / routing weights; remaining lanes are zero (sliced off in the
    wrapper).
    """
    tm, e_pad = logits.shape
    col = lax.broadcasted_iota(jnp.int32, (tm, e_pad), 1)
    valid = col < n_experts                                  # mask padded experts

    # numerically-stable softmax numerator in f32 (matches torch softmax(-1))
    logits = jnp.where(valid, logits, jnp.float32(-1e30))
    m = jnp.max(logits, axis=-1, keepdims=True)
    p = jnp.exp(logits - m)
    p = jnp.where(valid, p, jnp.float32(0.0))

    renorm = norm_topk_prob and top_k > 1
    if renorm:
        # The per-row softmax denominator is a positive common scale: ordering
        # is unchanged and it cancels exactly in the final top-k renorm, so
        # skip the division (and the full-tile multiply) entirely.
        scores = p
    else:
        scores = p / jnp.sum(p, axis=-1, keepdims=True)      # exact softmax

    # padded lanes must never win top-k (real scores are >= 0)
    scores = jnp.where(valid, scores, jnp.float32(-1.0))

    out_lanes = idx_ref.shape[-1]
    ocol = lax.broadcasted_iota(jnp.int32, (tm, out_lanes), 1)
    out_w = jnp.zeros((tm, out_lanes), jnp.float32)
    out_i = jnp.zeros((tm, out_lanes), jnp.int32)

    # iterative top-k: max -> argmax (lowest index on ties) -> mask out
    work = scores
    for j in range(top_k):
        v = jnp.max(work, axis=-1, keepdims=True)            # (tm, 1)
        hit = work == v
        idx = jnp.min(jnp.where(hit, col, jnp.int32(e_pad)),
                      axis=-1, keepdims=True)                 # (tm, 1) int32
        out_w = jnp.where(ocol == j, v, out_w)
        out_i = jnp.where(ocol == j, idx, out_i)
        work = jnp.where(col == idx, jnp.float32(-1.0), work)

    if renorm:
        # exact division (torch uses exact div; approx recip would perturb the
        # returned weights since nothing cancels it downstream)
        s = jnp.sum(out_w, axis=-1, keepdims=True)            # zeros elsewhere
        out_w = out_w / (s + jnp.float32(1e-20))

    idx_ref[...] = out_i
    wt_ref[...] = out_w.astype(wt_ref.dtype)


# ------------------------------ kernels --------------------------------------

def _gate_kernel_1d(x_ref, w_ref, idx_ref, wt_ref, *,
                    top_k, n_experts, norm_topk_prob):
    """Preferred path: whole hidden dim resident, 1-D grid over token tiles.

    x_ref  : (tm, h)        activation tile
    w_ref  : (e_pad, h)     router weight (resident across the whole grid)
    idx_ref: (tm, 128)      int32 expert ids (lanes [0, top_k))
    wt_ref : (tm, 128)      f32 renormalized weights (lanes [0, top_k))
    """
    logits = lax.dot_general(
        x_ref[...], w_ref[...],
        dimension_numbers=(((1,), (1,)), ((), ())),           # contract hidden
        preferred_element_type=jnp.float32)
    _topk_epilogue(logits, idx_ref, wt_ref, top_k=top_k,
                   n_experts=n_experts, norm_topk_prob=norm_topk_prob)


def _gate_kernel_2d(x_ref, w_ref, idx_ref, wt_ref, acc_ref, *,
                    top_k, n_experts, norm_topk_prob):
    """Fallback path: hidden (reduction) axis tiled, f32 VMEM accumulator."""
    k_id = pl.program_id(1)

    @pl.when(k_id == 0)
    def _init():
        acc_ref[...] = jnp.zeros_like(acc_ref)

    acc_ref[...] += lax.dot_general(
        x_ref[...], w_ref[...],
        dimension_numbers=(((1,), (1,)), ((), ())),
        preferred_element_type=jnp.float32)

    @pl.when(k_id == pl.num_programs(1) - 1)
    def _finalize():
        _topk_epilogue(acc_ref[...], idx_ref, wt_ref, top_k=top_k,
                       n_experts=n_experts, norm_topk_prob=norm_topk_prob)


# ------------------------------ wrapper --------------------------------------

def qwen_moe_gate(hidden_states, weight, *, top_k, norm_topk_prob=True):
    """Pallas QwenMoEGate forward: returns (topk_idx, topk_weight, aux_loss)."""
    if hidden_states.ndim == 2:
        bsz, seq_len = 1, hidden_states.shape[0]
    else:
        bsz, seq_len = hidden_states.shape[0], hidden_states.shape[1]
    h = hidden_states.shape[-1]
    n_experts = weight.shape[0]

    x = hidden_states.reshape(-1, h)
    n_tokens = x.shape[0]

    e_pad = pl.cdiv(n_experts, 128) * 128        # lane-dense logits / softmax
    out_lanes = 128                              # lane-dense output slabs
    x_bytes = x.dtype.itemsize
    w_bytes = weight.dtype.itemsize

    # ---- generation-aware VMEM budget --------------------------------------
    try:
        vmem_cap = pltpu.get_tpu_info().vmem_capacity_bytes  # 64 MiB v7x / 128 MiB v5e,v6e
    except Exception:
        vmem_cap = 64 * 1024 * 1024                          # safe everywhere
    budget = int((vmem_cap * 3) // 4)                        # headroom for compiler scratch

    def _fits(tm, tk, with_acc):
        act = 2 * tm * tk * x_bytes                 # activations, double-buffered
        wcost = 2 * e_pad * tk * w_bytes            # router weight (conservative 2x)
        outs = 2 * 2 * tm * out_lanes * 4           # both outputs, double-buffered
        tmp = 4 * tm * e_pad * 4                    # epilogue temporaries headroom
        acc = tm * e_pad * 4 if with_acc else 0
        return act + wcost + outs + tmp + acc <= budget

    t8 = max(8, pl.cdiv(n_tokens, 8) * 8)
    tm_cands = [c for c in (1024, 512, 256, 128, 64, 32, 16, 8) if c <= t8] or [8]

    fit_a = [c for c in tm_cands if _fits(c, h, with_acc=False)]

    if fit_a:
        # ---- preferred path: whole hidden dim resident, 1-D token grid -----
        tm = fit_a[0]
        no_pad = [c for c in fit_a if n_tokens % c == 0]
        if no_pad and no_pad[0] * 4 >= tm:
            tm = no_pad[0]                          # avoid host-side activation pad
        # v7x megacore: keep >= 2 token tiles so both TensorCores get work
        while tm > 8 and pl.cdiv(t8, tm) < 2:
            tm //= 2
        t_pad = pl.cdiv(n_tokens, tm) * tm

        x_p = x if t_pad == n_tokens else jnp.pad(x, ((0, t_pad - n_tokens), (0, 0)))
        w_p = weight if e_pad == n_experts else jnp.pad(
            weight, ((0, e_pad - n_experts), (0, 0)))

        kernel = functools.partial(
            _gate_kernel_1d, top_k=top_k, n_experts=n_experts,
            norm_topk_prob=norm_topk_prob)

        topk_idx, topk_wt = pl.pallas_call(
            kernel,
            out_shape=(
                jax.ShapeDtypeStruct((t_pad, out_lanes), jnp.int32),
                jax.ShapeDtypeStruct((t_pad, out_lanes), jnp.float32),
            ),
            grid_spec=pltpu.PrefetchScalarGridSpec(
                num_scalar_prefetch=0,
                grid=(t_pad // tm,),
                in_specs=[
                    pl.BlockSpec((tm, h), lambda i: (i, 0)),       # activations
                    pl.BlockSpec((e_pad, h), lambda i: (0, 0)),    # resident weight
                ],
                out_specs=[
                    pl.BlockSpec((tm, out_lanes), lambda i: (i, 0)),
                    pl.BlockSpec((tm, out_lanes), lambda i: (i, 0)),
                ],
            ),
            compiler_params=pltpu.CompilerParams(
                dimension_semantics=("parallel",),
                vmem_limit_bytes=budget),
        )(x_p, w_p)
    else:
        # ---- fallback: tile the hidden (reduction) axis, VMEM accumulator --
        tm = next((c for c in tm_cands if c <= 256), 8)
        tk = next((c for c in (2048, 1024, 512, 256, 128)
                   if _fits(tm, c, with_acc=True)), 128)
        t_pad = pl.cdiv(n_tokens, tm) * tm
        h_pad = pl.cdiv(h, tk) * tk
        x_p = jnp.pad(x, ((0, t_pad - n_tokens), (0, h_pad - h)))
        w_p = jnp.pad(weight, ((0, e_pad - n_experts), (0, h_pad - h)))

        kernel = functools.partial(
            _gate_kernel_2d, top_k=top_k, n_experts=n_experts,
            norm_topk_prob=norm_topk_prob)

        topk_idx, topk_wt = pl.pallas_call(
            kernel,
            out_shape=(
                jax.ShapeDtypeStruct((t_pad, out_lanes), jnp.int32),
                jax.ShapeDtypeStruct((t_pad, out_lanes), jnp.float32),
            ),
            grid_spec=pltpu.PrefetchScalarGridSpec(
                num_scalar_prefetch=0,
                grid=(t_pad // tm, h_pad // tk),
                in_specs=[
                    pl.BlockSpec((tm, tk), lambda i, k: (i, k)),
                    pl.BlockSpec((e_pad, tk), lambda i, k: (0, k)),
                ],
                out_specs=[
                    pl.BlockSpec((tm, out_lanes), lambda i, k: (i, 0)),
                    pl.BlockSpec((tm, out_lanes), lambda i, k: (i, 0)),
                ],
                scratch_shapes=[pltpu.VMEM((tm, e_pad), jnp.float32)],
            ),
            compiler_params=pltpu.CompilerParams(
                dimension_semantics=("parallel", "arbitrary"),
                vmem_limit_bytes=budget),
        )(x_p, w_p)

    topk_idx = topk_idx[:n_tokens, :top_k].reshape(bsz, seq_len, top_k)
    topk_wt = topk_wt[:n_tokens, :top_k].reshape(bsz, seq_len, top_k)
    topk_wt = topk_wt.astype(hidden_states.dtype)
    # TODO(synk): compute_aux_loss is only produced when self.training and
    # seq_aux; inference forward returns None, as here.
    aux_loss = None
    return topk_idx, topk_wt, aux_loss


# ------------------------------ reference ------------------------------------

def reference_gate(hidden_states, weight, *, top_k, norm_topk_prob=True):
    if hidden_states.ndim == 2:
        bsz, seq_len = 1, hidden_states.shape[0]
    else:
        bsz, seq_len = hidden_states.shape[0], hidden_states.shape[1]
    h = hidden_states.shape[-1]
    x = hidden_states.reshape(-1, h)
    logits = x @ weight.T
    scores = jax.nn.softmax(logits, axis=-1)
    topv, topi = lax.top_k(scores, top_k)          # sorted desc, low-index ties
    if top_k > 1 and norm_topk_prob:
        topv = topv / (jnp.sum(topv, axis=-1, keepdims=True) + 1e-20)
    return (topi.reshape(bsz, seq_len, top_k),
            topv.reshape(bsz, seq_len, top_k),
            None)


# --------------------------------- main ---------------------------------------

if __name__ == "__main__":
    # Small config consistent with the module: 64 experts, top-8 routing.
    B, S, hidden = 2, 16, 64
    num_experts, top_k = 64, 8

    key = jax.random.PRNGKey(0)
    k_w, k_x = jax.random.split(key)
    weight = 0.05 * jax.random.normal(k_w, (num_experts, hidden), jnp.float32)
    x = jax.random.normal(k_x, (B, S, hidden), jnp.float32)

    topk_idx, topk_wt, aux_loss = qwen_moe_gate(x, weight, top_k=top_k)
    topk_wt = jax.block_until_ready(topk_wt)
    topk_idx = jax.block_until_ready(topk_idx)

    ref_idx, ref_wt, _ = reference_gate(x, weight, top_k=top_k)

    assert topk_idx.shape == (B, S, top_k)
    assert topk_wt.shape == (B, S, top_k)
    assert aux_loss is None
    assert jnp.array_equal(topk_idx, ref_idx), "expert index mismatch"
    assert jnp.allclose(topk_wt, ref_wt, atol=1e-5, rtol=1e-5), "weight mismatch"

    print("KERNEL_OK")
</pallas_src>

<mosaic_0001>
module attributes {stable_mosaic.version = 11 : i64} {
  func.func @_gate_kernel_1d(%arg0: i32, %arg1: memref<16x64xf32, #tpu.memory_space<vmem>>, %arg2: memref<128x64xf32, #tpu.memory_space<vmem>>, %arg3: memref<16x128xi32, #tpu.memory_space<vmem>>, %arg4: memref<16x128xf32, #tpu.memory_space<vmem>>) attributes {dimension_semantics = [#tpu.dimension_semantics<parallel>], iteration_bounds = array<i64: 2>, scalar_prefetch = 0 : i64, scratch_operands = 0 : i64, tpu.core_type = #tpu.core_type<tc>, window_params = [{transform_indices = @transform_0, window_bounds = array<i64: 16, 64>}, {pipeline_mode = #tpu.pipeline_mode<synchronous>, transform_indices = @transform_1, window_bounds = array<i64: 128, 64>}, {transform_indices = @transform_2, window_bounds = array<i64: 16, 128>}, {transform_indices = @transform_3, window_bounds = array<i64: 16, 128>}]} {
    %c0 = arith.constant 0 : index
    %c0_0 = arith.constant 0 : index
    %0 = vector.load %arg1[%c0, %c0_0] : memref<16x64xf32, #tpu.memory_space<vmem>>, vector<16x64xf32>
    %c0_1 = arith.constant 0 : index
    %c0_2 = arith.constant 0 : index
    %1 = vector.load %arg2[%c0_1, %c0_2] : memref<128x64xf32, #tpu.memory_space<vmem>>, vector<128x64xf32>
    %cst = arith.constant dense<0.000000e+00> : vector<16x128xf32>
    %2 = tpu.matmul %0, %1, %cst {dimension_numbers = #tpu.dot_dimension_numbers<[1], [1], [0], [0], [0, 0, 1, 0], [], []>} : vector<16x64xf32>, vector<128x64xf32>, vector<16x128xf32> -> vector<16x128xf32>
    %3 = tpu.iota {dimensions = array<i32: 1>} : vector<16x128xi32>
    %c64_i32 = arith.constant 64 : i32
    %4 = vector.broadcast %c64_i32 : i32 to vector<16x128xi32>
    %5 = arith.cmpi slt, %3, %4 : vector<16x128xi32>
    %cst_3 = arith.constant -1.000000e+30 : f32
    %6 = vector.broadcast %cst_3 : f32 to vector<16x128xf32>
    %7 = arith.select %5, %2, %6 : vector<16x128xi1>, vector<16x128xf32>
    %cst_4 = arith.constant dense<0xFF800000> : vector<16xf32>
    %8 = vector.multi_reduction <maximumf>, %7, %cst_4 [1] : vector<16x128xf32> to vector<16xf32>
    %9 = vector.shape_cast %8 : vector<16xf32> to vector<16x1xf32>
    %10 = vector.broadcast %9 : vector<16x1xf32> to vector<16x128xf32>
    %11 = arith.subf %7, %10 : vector<16x128xf32>
    %12 = math.exp %11 : vector<16x128xf32>
    %cst_5 = arith.constant 0.000000e+00 : f32
    %13 = vector.broadcast %cst_5 : f32 to vector<16x128xf32>
    %14 = arith.select %5, %12, %13 : vector<16x128xi1>, vector<16x128xf32>
    %cst_6 = arith.constant -1.000000e+00 : f32
    %15 = vector.broadcast %cst_6 : f32 to vector<16x128xf32>
    %16 = arith.select %5, %14, %15 : vector<16x128xi1>, vector<16x128xf32>
    %17 = tpu.iota {dimensions = array<i32: 1>} : vector<16x128xi32>
    %cst_7 = arith.constant 0.000000e+00 : f32
    %18 = vector.broadcast %cst_7 : f32 to vector<16x128xf32>
    %c0_i32 = arith.constant 0 : i32
    %19 = vector.broadcast %c0_i32 : i32 to vector<16x128xi32>
    %cst_8 = arith.constant dense<0xFF800000> : vector<16xf32>
    %20 = vector.multi_reduction <maximumf>, %16, %cst_8 [1] : vector<16x128xf32> to vector<16xf32>
    %21 = vector.shape_cast %20 : vector<16xf32> to vector<16x1xf32>
    %22 = vector.broadcast %21 : vector<16x1xf32> to vector<16x128xf32>
    %23 = arith.cmpf oeq, %16, %22 : vector<16x128xf32>
    %c128_i32 = arith.constant 128 : i32
    %24 = vector.broadcast %c128_i32 : i32 to vector<16x128xi32>
    %25 = arith.select %23, %3, %24 : vector<16x128xi1>, vector<16x128xi32>
    %cst_9 = arith.constant dense<2147483647> : vector<16xi32>
    %26 = vector.multi_reduction <minsi>, %25, %cst_9 [1] : vector<16x128xi32> to vector<16xi32>
    %27 = vector.shape_cast %26 : vector<16xi32> to vector<16x1xi32>
    %c0_i32_10 = arith.constant 0 : i32
    %28 = vector.broadcast %c0_i32_10 : i32 to vector<16x128xi32>
    %29 = arith.cmpi eq, %17, %28 : vector<16x128xi32>
    %30 = vector.shape_cast %21 : vector<16x1xf32> to vector<16x1xf32>
    %31 = vector.broadcast %30 : vector<16x1xf32> to vector<16x128xf32>
    %32 = arith.select %29, %31, %18 : vector<16x128xi1>, vector<16x128xf32>
    %c0_i32_11 = arith.constant 0 : i32
    %33 = vector.broadcast %c0_i32_11 : i32 to vector<16x128xi32>
    %34 = arith.cmpi eq, %17, %33 : vector<16x128xi32>
    %35 = vector.shape_cast %27 : vector<16x1xi32> to vector<16x1xi32>
    %36 = vector.broadcast %35 : vector<16x1xi32> to vector<16x128xi32>
    %37 = arith.select %34, %36, %19 : vector<16x128xi1>, vector<16x128xi32>
    %38 = vector.broadcast %27 : vector<16x1xi32> to vector<16x128xi32>
    %39 = arith.cmpi eq, %3, %38 : vector<16x128xi32>
    %cst_12 = arith.constant -1.000000e+00 : f32
    %40 = vector.broadcast %cst_12 : f32 to vector<16x128xf32>
    %41 = arith.select %39, %40, %16 : vector<16x128xi1>, vector<16x128xf32>
    %cst_13 = arith.constant dense<0xFF800000> : vector<16xf32>
    %42 = vector.multi_reduction <maximumf>, %41, %cst_13 [1] : vector<16x128xf32> to vector<16xf32>
    %43 = vector.shape_cast %42 : vector<16xf32> to vector<16x1xf32>
    %44 = vector.broadcast %43 : vector<16x1xf32> to vector<16x128xf32>
    %45 = arith.cmpf oeq, %41, %44 : vector<16x128xf32>
    %c128_i32_14 = arith.constant 128 : i32
    %46 = vector.broadcast %c128_i32_14 : i32 to vector<16x128xi32>
    %47 = arith.select %45, %3, %46 : vector<16x128xi1>, vector<16x128xi32>
    %cst_15 = arith.constant dense<2147483647> : vector<16xi32>
    %48 = vector.multi_reduction <minsi>, %47, %cst_15 [1] : vector<16x128xi32> to vector<16xi32>
    %49 = vector.shape_cast %48 : vector<16xi32> to vector<16x1xi32>
    %c1_i32 = arith.constant 1 : i32
    %50 = vector.broadcast %c1_i32 : i32 to vector<16x128xi32>
    %51 = arith.cmpi eq, %17, %50 : vector<16x128xi32>
    %52 = vector.shape_cast %43 : vector<16x1xf32> to vector<16x1xf32>
    %53 = vector.broadcast %52 : vector<16x1xf32> to vector<16x128xf32>
    %54 = arith.select %51, %53, %32 : vector<16x128xi1>, vector<16x128xf32>
    %c1_i32_16 = arith.constant 1 : i32
    %55 = vector.broadcast %c1_i32_16 : i32 to vector<16x128xi32>
    %56 = arith.cmpi eq, %17, %55 : vector<16x128xi32>
    %57 = vector.shape_cast %49 : vector<16x1xi32> to vector<16x1xi32>
    %58 = vector.broadcast %57 : vector<16x1xi32> to vector<16x128xi32>
    %59 = arith.select %56, %58, %37 : vector<16x128xi1>, vector<16x128xi32>
    %60 = vector.broadcast %49 : vector<16x1xi32> to vector<16x128xi32>
    %61 = arith.cmpi eq, %3, %60 : vector<16x128xi32>
    %cst_17 = arith.constant -1.000000e+00 : f32
    %62 = vector.broadcast %cst_17 : f32 to vector<16x128xf32>
    %63 = arith.select %61, %62, %41 : vector<16x128xi1>, vector<16x128xf32>
    %cst_18 = arith.constant dense<0xFF800000> : vector<16xf32>
    %64 = vector.multi_reduction <maximumf>, %63, %cst_18 [1] : vector<16x128xf32> to vector<16xf32>
    %65 = vector.shape_cast %64 : vector<16xf32> to vector<16x1xf32>
    %66 = vector.broadcast %65 : vector<16x1xf32> to vector<16x128xf32>
    %67 = arith.cmpf oeq, %63, %66 : vector<16x128xf32>
    %c128_i32_19 = arith.constant 128 : i32
    %68 = vector.broadcast %c128_i32_19 : i32 to vector<16x128xi32>
    %69 = arith.select %67, %3, %68 : vector<16x128xi1>, vector<16x128xi32>
    %cst_20 = arith.constant dense<2147483647> : vector<16xi32>
    %70 = vector.multi_reduction <minsi>, %69, %cst_20 [1] : vector<16x128xi32> to vector<16xi32>
    %71 = vector.shape_cast %70 : vector<16xi32> to vector<16x1xi32>
    %c2_i32 = arith.constant 2 : i32
    %72 = vector.broadcast %c2_i32 : i32 to vector<16x128xi32>
    %73 = arith.cmpi eq, %17, %72 : vector<16x128xi32>
    %74 = vector.shape_cast %65 : vector<16x1xf32> to vector<16x1xf32>
    %75 = vector.broadcast %74 : vector<16x1xf32> to vector<16x128xf32>
    %76 = arith.select %73, %75, %54 : vector<16x128xi1>, vector<16x128xf32>
    %c2_i32_21 = arith.constant 2 : i32
    %77 = vector.broadcast %c2_i32_21 : i32 to vector<16x128xi32>
    %78 = arith.cmpi eq, %17, %77 : vector<16x128xi32>
    %79 = vector.shape_cast %71 : vector<16x1xi32> to vector<16x1xi32>
    %80 = vector.broadcast %79 : vector<16x1xi32> to vector<16x128xi32>
    %81 = arith.select %78, %80, %59 : vector<16x128xi1>, vector<16x128xi32>
    %82 = vector.broadcast %71 : vector<16x1xi32> to vector<16x128xi32>
    %83 = arith.cmpi eq, %3, %82 : vector<16x128xi32>
    %cst_22 = arith.constant -1.000000e+00 : f32
    %84 = vector.broadcast %cst_22 : f32 to vector<16x128xf32>
    %85 = arith.select %83, %84, %63 : vector<16x128xi1>, vector<16x128xf32>
    %cst_23 = arith.constant dense<0xFF800000> : vector<16xf32>
    %86 = vector.multi_reduction <maximumf>, %85, %cst_23 [1] : vector<16x128xf32> to vector<16xf32>
    %87 = vector.shape_cast %86 : vector<16xf32> to vector<16x1xf32>
    %88 = vector.broadcast %87 : vector<16x1xf32> to vector<16x128xf32>
    %89 = arith.cmpf oeq, %85, %88 : vector<16x128xf32>
    %c128_i32_24 = arith.constant 128 : i32
    %90 = vector.broadcast %c128_i32_24 : i32 to vector<16x128xi32>
    %91 = arith.select %89, %3, %90 : vector<16x128xi1>, vector<16x128xi32>
    %cst_25 = arith.constant dense<2147483647> : vector<16xi32>
    %92 = vector.multi_reduction <minsi>, %91, %cst_25 [1] : vector<16x128xi32> to vector<16xi32>
    %93 = vector.shape_cast %92 : vector<16xi32> to vector<16x1xi32>
    %c3_i32 = arith.constant 3 : i32
    %94 = vector.broadcast %c3_i32 : i32 to vector<16x128xi32>
    %95 = arith.cmpi eq, %17, %94 : vector<16x128xi32>
    %96 = vector.shape_cast %87 : vector<16x1xf32> to vector<16x1xf32>
    %97 = vector.broadcast %96 : vector<16x1xf32> to vector<16x128xf32>
    %98 = arith.select %95, %97, %76 : vector<16x128xi1>, vector<16x128xf32>
    %c3_i32_26 = arith.constant 3 : i32
    %99 = vector.broadcast %c3_i32_26 : i32 to vector<16x128xi32>
    %100 = arith.cmpi eq, %17, %99 : vector<16x128xi32>
    %101 = vector.shape_cast %93 : vector<16x1xi32> to vector<16x1xi32>
    %102 = vector.broadcast %101 : vector<16x1xi32> to vector<16x128xi32>
    %103 = arith.select %100, %102, %81 : vector<16x128xi1>, vector<16x128xi32>
    %104 = vector.broadcast %93 : vector<16x1xi32> to vector<16x128xi32>
    %105 = arith.cmpi eq, %3, %104 : vector<16x128xi32>
    %cst_27 = arith.constant -1.000000e+00 : f32
    %106 = vector.broadcast %cst_27 : f32 to vector<16x128xf32>
    %107 = arith.select %105, %106, %85 : vector<16x128xi1>, vector<16x128xf32>
    %cst_28 = arith.constant dense<0xFF800000> : vector<16xf32>
    %108 = vector.multi_reduction <maximumf>, %107, %cst_28 [1] : vector<16x128xf32> to vector<16xf32>
    %109 = vector.shape_cast %108 : vector<16xf32> to vector<16x1xf32>
    %110 = vector.broadcast %109 : vector<16x1xf32> to vector<16x128xf32>
    %111 = arith.cmpf oeq, %107, %110 : vector<16x128xf32>
    %c128_i32_29 = arith.constant 128 : i32
    %112 = vector.broadcast %c128_i32_29 : i32 to vector<16x128xi32>
    %113 = arith.select %111, %3, %112 : vector<16x128xi1>, vector<16x128xi32>
    %cst_30 = arith.constant dense<2147483647> : vector<16xi32>
    %114 = vector.multi_reduction <minsi>, %113, %cst_30 [1] : vector<16x128xi32> to vector<16xi32>
    %115 = vector.shape_cast %114 : vector<16xi32> to vector<16x1xi32>
    %c4_i32 = arith.constant 4 : i32
    %116 = vector.broadcast %c4_i32 : i32 to vector<16x128xi32>
    %117 = arith.cmpi eq, %17, %116 : vector<16x128xi32>
    %118 = vector.shape_cast %109 : vector<16x1xf32> to vector<16x1xf32>
    %119 = vector.broadcast %118 : vector<16x1xf32> to vector<16x128xf32>
    %120 = arith.select %117, %119, %98 : vector<16x128xi1>, vector<16x128xf32>
    %c4_i32_31 = arith.constant 4 : i32
    %121 = vector.broadcast %c4_i32_31 : i32 to vector<16x128xi32>
    %122 = arith.cmpi eq, %17, %121 : vector<16x128xi32>
    %123 = vector.shape_cast %115 : vector<16x1xi32> to vector<16x1xi32>
    %124 = vector.broadcast %123 : vector<16x1xi32> to vector<16x128xi32>
    %125 = arith.select %122, %124, %103 : vector<16x128xi1>, vector<16x128xi32>
    %126 = vector.broadcast %115 : vector<16x1xi32> to vector<16x128xi32>
    %127 = arith.cmpi eq, %3, %126 : vector<16x128xi32>
    %cst_32 = arith.constant -1.000000e+00 : f32
    %128 = vector.broadcast %cst_32 : f32 to vector<16x128xf32>
    %129 = arith.select %127, %128, %107 : vector<16x128xi1>, vector<16x128xf32>
    %cst_33 = arith.constant dense<0xFF800000> : vector<16xf32>
    %130 = vector.multi_reduction <maximumf>, %129, %cst_33 [1] : vector<16x128xf32> to vector<16xf32>
    %131 = vector.shape_cast %130 : vector<16xf32> to vector<16x1xf32>
    %132 = vector.broadcast %131 : vector<16x1xf32> to vector<16x128xf32>
    %133 = arith.cmpf oeq, %129, %132 : vector<16x128xf32>
    %c128_i32_34 = arith.constant 128 : i32
    %134 = vector.broadcast %c128_i32_34 : i32 to vector<16x128xi32>
    %135 = arith.select %133, %3, %134 : vector<16x128xi1>, vector<16x128xi32>
    %cst_35 = arith.constant dense<2147483647> : vector<16xi32>
    %136 = vector.multi_reduction <minsi>, %135, %cst_35 [1] : vector<16x128xi32> to vector<16xi32>
    %137 = vector.shape_cast %136 : vector<16xi32> to vector<16x1xi32>
    %c5_i32 = arith.constant 5 : i32
    %138 = vector.broadcast %c5_i32 : i32 to vector<16x128xi32>
    %139 = arith.cmpi eq, %17, %138 : vector<16x128xi32>
    %140 = vector.shape_cast %131 : vector<16x1xf32> to vector<16x1xf32>
    %141 = vector.broadcast %140 : vector<16x1xf32> to vector<16x128xf32>
    %142 = arith.select %139, %141, %120 : vector<16x128xi1>, vector<16x128xf32>
    %c5_i32_36 = arith.constant 5 : i32
    %143 = vector.broadcast %c5_i32_36 : i32 to vector<16x128xi32>
    %144 = arith.cmpi eq, %17, %143 : vector<16x128xi32>
    %145 = vector.shape_cast %137 : vector<16x1xi32> to vector<16x1xi32>
    %146 = vector.broadcast %145 : vector<16x1xi32> to vector<16x128xi32>
    %147 = arith.select %144, %146, %125 : vector<16x128xi1>, vector<16x128xi32>
    %148 = vector.broadcast %137 : vector<16x1xi32> to vector<16x128xi32>
    %149 = arith.cmpi eq, %3, %148 : vector<16x128xi32>
    %cst_37 = arith.constant -1.000000e+00 : f32
    %150 = vector.broadcast %cst_37 : f32 to vector<16x128xf32>
    %151 = arith.select %149, %150, %129 : vector<16x128xi1>, vector<16x128xf32>
    %cst_38 = arith.constant dense<0xFF800000> : vector<16xf32>
    %152 = vector.multi_reduction <maximumf>, %151, %cst_38 [1] : vector<16x128xf32> to vector<16xf32>
    %153 = vector.shape_cast %152 : vector<16xf32> to vector<16x1xf32>
    %154 = vector.broadcast %153 : vector<16x1xf32> to vector<16x128xf32>
    %155 = arith.cmpf oeq, %151, %154 : vector<16x128xf32>
    %c128_i32_39 = arith.constant 128 : i32
    %156 = vector.broadcast %c128_i32_39 : i32 to vector<16x128xi32>
    %157 = arith.select %155, %3, %156 : vector<16x128xi1>, vector<16x128xi32>
    %cst_40 = arith.constant dense<2147483647> : vector<16xi32>
    %158 = vector.multi_reduction <minsi>, %157, %cst_40 [1] : vector<16x128xi32> to vector<16xi32>
    %159 = vector.shape_cast %158 : vector<16xi32> to vector<16x1xi32>
    %c6_i32 = arith.constant 6 : i32
    %160 = vector.broadcast %c6_i32 : i32 to vector<16x128xi32>
    %161 = arith.cmpi eq, %17, %160 : vector<16x128xi32>
    %162 = vector.shape_cast %153 : vector<16x1xf32> to vector<16x1xf32>
    %163 = vector.broadcast %162 : vector<16x1xf32> to vector<16x128xf32>
    %164 = arith.select %161, %163, %142 : vector<16x128xi1>, vector<16x128xf32>
    %c6_i32_41 = arith.constant 6 : i32
    %165 = vector.broadcast %c6_i32_41 : i32 to vector<16x128xi32>
    %166 = arith.cmpi eq, %17, %165 : vector<16x128xi32>
    %167 = vector.shape_cast %159 : vector<16x1xi32> to vector<16x1xi32>
    %168 = vector.broadcast %167 : vector<16x1xi32> to vector<16x128xi32>
    %169 = arith.select %166, %168, %147 : vector<16x128xi1>, vector<16x128xi32>
    %170 = vector.broadcast %159 : vector<16x1xi32> to vector<16x128xi32>
    %171 = arith.cmpi eq, %3, %170 : vector<16x128xi32>
    %cst_42 = arith.constant -1.000000e+00 : f32
    %172 = vector.broadcast %cst_42 : f32 to vector<16x128xf32>
    %173 = arith.select %171, %172, %151 : vector<16x128xi1>, vector<16x128xf32>
    %cst_43 = arith.constant dense<0xFF800000> : vector<16xf32>
    %174 = vector.multi_reduction <maximumf>, %173, %cst_43 [1] : vector<16x128xf32> to vector<16xf32>
    %175 = vector.shape_cast %174 : vector<16xf32> to vector<16x1xf32>
    %176 = vector.broadcast %175 : vector<16x1xf32> to vector<16x128xf32>
    %177 = arith.cmpf oeq, %173, %176 : vector<16x128xf32>
    %c128_i32_44 = arith.constant 128 : i32
    %178 = vector.broadcast %c128_i32_44 : i32 to vector<16x128xi32>
    %179 = arith.select %177, %3, %178 : vector<16x128xi1>, vector<16x128xi32>
    %cst_45 = arith.constant dense<2147483647> : vector<16xi32>
    %180 = vector.multi_reduction <minsi>, %179, %cst_45 [1] : vector<16x128xi32> to vector<16xi32>
    %181 = vector.shape_cast %180 : vector<16xi32> to vector<16x1xi32>
    %c7_i32 = arith.constant 7 : i32
    %182 = vector.broadcast %c7_i32 : i32 to vector<16x128xi32>
    %183 = arith.cmpi eq, %17, %182 : vector<16x128xi32>
    %184 = vector.shape_cast %175 : vector<16x1xf32> to vector<16x1xf32>
    %185 = vector.broadcast %184 : vector<16x1xf32> to vector<16x128xf32>
    %186 = arith.select %183, %185, %164 : vector<16x128xi1>, vector<16x128xf32>
    %c7_i32_46 = arith.constant 7 : i32
    %187 = vector.broadcast %c7_i32_46 : i32 to vector<16x128xi32>
    %188 = arith.cmpi eq, %17, %187 : vector<16x128xi32>
    %189 = vector.shape_cast %181 : vector<16x1xi32> to vector<16x1xi32>
    %190 = vector.broadcast %189 : vector<16x1xi32> to vector<16x128xi32>
    %191 = arith.select %188, %190, %169 : vector<16x128xi1>, vector<16x128xi32>
    %cst_47 = arith.constant dense<0.000000e+00> : vector<16xf32>
    %192 = vector.multi_reduction <add>, %186, %cst_47 [1] : vector<16x128xf32> to vector<16xf32>
    %193 = vector.shape_cast %192 : vector<16xf32> to vector<16x1xf32>
    %cst_48 = arith.constant 9.99999968E-21 : f32
    %194 = vector.broadcast %cst_48 : f32 to vector<16x1xf32>
    %195 = arith.addf %193, %194 : vector<16x1xf32>
    %196 = vector.broadcast %195 : vector<16x1xf32> to vector<16x128xf32>
    %197 = arith.divf %186, %196 : vector<16x128xf32>
    %c0_49 = arith.constant 0 : index
    %c0_50 = arith.constant 0 : index
    %198 = vector.load %arg3[%c0_49, %c0_50] : memref<16x128xi32, #tpu.memory_space<vmem>>, vector<16x128xi32>
    tpu.vector_store %arg3[%c0_49, %c0_50], %191 {strides = array<i32>} : memref<16x128xi32, #tpu.memory_space<vmem>>, vector<16x128xi32>,
    %c0_51 = arith.constant 0 : index
    %c0_52 = arith.constant 0 : index
    %199 = vector.load %arg4[%c0_51, %c0_52] : memref<16x128xf32, #tpu.memory_space<vmem>>, vector<16x128xf32>
    tpu.vector_store %arg4[%c0_51, %c0_52], %197 {strides = array<i32>} : memref<16x128xf32, #tpu.memory_space<vmem>>, vector<16x128xf32>,
    return
  }
  func.func @transform_0(%arg0: i32) -> (i32, i32) {
    %c0_i32 = arith.constant 0 : i32
    %c0_i32_0 = arith.constant 0 : i32
    return %arg0, %c0_i32 : i32, i32
  }
  func.func @transform_1(%arg0: i32) -> (i32, i32) {
    %c0_i32 = arith.constant 0 : i32
    %c0_i32_0 = arith.constant 0 : i32
    %c0_i32_1 = arith.constant 0 : i32
    return %c0_i32, %c0_i32_0 : i32, i32
  }
  func.func @transform_2(%arg0: i32) -> (i32, i32) {
    %c0_i32 = arith.constant 0 : i32
    %c0_i32_0 = arith.constant 0 : i32
    return %arg0, %c0_i32 : i32, i32
  }
  func.func @transform_3(%arg0: i32) -> (i32, i32) {
    %c0_i32 = arith.constant 0 : i32
    %c0_i32_0 = arith.constant 0 : i32
    return %arg0, %c0_i32 : i32, i32
  }
}

</mosaic_0001>

<bundles_post_ra>
// kernel: tpu_custom_call.1
= control target key start
LH: loop header
LB: loop body
LE: loop exit
PB: predicated region body
PF: predicated region fallthrough
CT: control target
= control target key end

     0   :  { %9 = vsyncpa [#allocation3], 0  ;;  %s1427_s0 = inlined_call_operand.vmem [shape: f32[32,64], index: 0, kind: input, shape index: {}]   ;;  %s1428_s1 = inlined_call_operand.vmem [shape: f32[128,64], index: 1, kind: input, shape index: {}]   ;;  %s1429_s2 = inlined_call_operand.hbm [shape: s32[32,128], index: 2, kind: output, shape index: {0}]   ;;  %s1430_s3 = inlined_call_operand.hbm [shape: f32[32,128], index: 3, kind: output, shape index: {1}]  }
   0x1   :  { %11 = vsyncpa [#allocation3 + $0x1], 0 }
   0x2   :  { %12 = vsyncpa [#allocation5], 0 }
   0x3   :  { %14 = vsyncpa [#allocation5 + $0x1], 0  ;;  %s1050_s12 = smov 0   ;;  %s1052_s13 = smov 0  }
   0x4   :  { %s1054_s14 = smov 0   ;;  %s1056_s15 = smov 0  }
   0x5 LB: > { %s1071_s16 = sadd.s32 4294967295, %s1026_s15   ;;  %s826_s17 = sadd.s32 4294967294, %s1026_s15   ;;  %s1026_s15 = sphi %s1056_s15, %s1436_s15   ;;  %s1022_s14 = sphi %s1054_s14, %s1435_s14   ;;  %s1018_s13 = sphi %s1052_s13, %s1434_s13   ;;  %s1014_s12 = sphi %s1050_s12, %s1433_s12  }
   0x6   : > { %s1075_s18 = sadd.s32 1, %s1026_s15   ;;  %s74_s19 = sadd.s32 1, %s1022_s14 }
   0x7   : > { %s71_s20 = ssub.s32 %s1026_s15, %s1075_s18  ;;  %p84_p0 = scmp.ne.s32.totalorder %s1022_s14, %s1018_s13 }
   0x8   : > { %p72_p1 = scmp.eq.s32.totalorder %s71_s20, 0  ;;  %p85_p2 = scmp.eq.s32.totalorder %s1071_s16, 1 }
   0x9   : > { %p90_p3 = scmp.ne.s32.totalorder %s1018_s13, %s1014_s12  ;;  %p91_p4 = scmp.eq.s32.totalorder %s826_s17, 1 }
   0xa   : > { %s1086_s21 = scalar_select %p72_p1, %s1022_s14, %s74_s19  }
   0xb   : > { %p1088_p5 = por %p85_p2, %p84_p0  ;;  %p1092_p6 = por %p91_p4, %p90_p3 }
   0xc   : > { %p829_p7 = scmp.ge.s32.totalorder %s1026_s15, 1  ;;  %p147_p8 = scmp.lt.s32.totalorder %s1026_s15, 3 }
   0xe   : > { %p148_p9 = pnand %p829_p7, %p147_p8 }
   0xf   : > { %s832_s30 = sshll.u32 (!%p148_p9), %s1071_s16, 1  ;;  %s1355_s25 = sand.u32 (!%p148_p9), 1, %s1018_s13  }
  0x10   : > { %151 = sbr.rel (%p148_p9) target bundleno = 3246 (0xcae), region = 28  ;;  %p177_p10 = scmp.lt.s32.totalorder (!%p148_p9), %s832_s30, 3 }
  0x11   : > { %s830_s26 = sshll.u32 (!%p148_p9), %s1355_s25, 4  ;;  %s860_s28 = sshll.u32 (!%p148_p9), %s1071_s16, 4 }
  0x12   : > { %s175_s27 = scalar_lea.vmem (!%p148_p9), [#allocation4], %s830_s26  ;;  %s727_s4 = scalar_lea.hbm (!%p148_p9), %s1430_s3, %s860_s28 }
  0x13   : > { %s728_s5 = sshll.u32 (!%p148_p9), %s175_s27, 4  ;;  %s730_s6 = sshll.u32 (!%p148_p9), %s727_s4, 4  ;;  %s729_s5 = int_to_ptr.vmem [resolvable:$true] %s728_s5  ;;  %s731_s6 = int_to_ptr.hbm [resolvable:$true] %s730_s6 }
  0x14   : > { %s699_s7 = scalar_lea.sflag (!%p148_p9), [#allocation5], %s1355_s25  ;;  %s946_s8 = sshra.s32 (!%p148_p9), %s731_s6, 4  ;;  %s947_s8 = int_to_ptr.hbm [resolvable:$true] %s946_s8 }
  0x15   : > { %v201_v0 = vld [vmem:[%s1428_s1 + $0x78] sm:$0xff]  ;;  %vm202_vm0 = vcmask 523264   ;;  %v200_v1 = vld [vmem:[%s1428_s1 + $0x70] sm:$0xff]  ;;  %v199_v2 = vld [vmem:[%s1428_s1 + $0x68] sm:$0xff]  ;;  %s1438_s30 = smov (!%p177_p10, %s832_s30), 3  ;;  %v280_v18 = vlaneseq  ;;  %s948_s9 = scalar_lea.hbm %s947_s8, 16 }
  0x16   : > { %834 = vmatpush.xpose.msk.msra.mxu0 %vm202_vm0, %v201_v0  ;;  %862 = vmatpush.xpose.msk.msra.mxu1 %vm202_vm0, %v201_v0  ;;  %v198_v3 = vld [vmem:[%s1428_s1 + $0x60] sm:$0xff]  ;;  %v197_v4 = vld [vmem:[%s1428_s1 + $0x58] sm:$0xff]  ;;  %v196_v5 = vld [vmem:[%s1428_s1 + $0x50] sm:$0xff]  ;;  %s833_s10 = sshll.u32 %s1438_s30, 3  ;;  %p949_p11 = scmp.ne.s32.totalorder %s947_s8, %s948_s9 }
  0x17   : > { %v195_v6 = vld [vmem:[%s1428_s1 + $0x48] sm:$0xff]  ;;  %v194_v7 = vld [vmem:[%s1428_s1 + $0x40] sm:$0xff]  ;;  %v193_v8 = vld [vmem:[%s1428_s1 + $0x38] sm:$0xff]  ;;  %s180_s24 = scalar_lea.vmem %s1427_s0, %s833_s10  ;;  %v1184_v19 = vand.u32 127, %v280_v18  ;;  %s952_s17 = scalar_lea.hbm %s1430_s3, 32 }
  0x18   : > { %v192_v9 = vld [vmem:[%s1428_s1 + $0x30] sm:$0xff]  ;;  %v191_v10 = vld [vmem:[%s1428_s1 + $0x28] sm:$0xff]  ;;  %v190_v11 = vld [vmem:[%s1428_s1 + $0x20] sm:$0xff]  ;;  %p950_p12 = pnand %p949_p11, %p1088_p5  ;;  %p953_p0 = scmp.lt.s32.totalorder %s947_s8, %s1430_s3 }
  0x19   : > { %v189_v12 = vld [vmem:[%s1428_s1 + $0x18] sm:$0xff]  ;;  %v188_v13 = vld [vmem:[%s1428_s1 + $0x10] sm:$0xff]  ;;  %v187_v14 = vld [vmem:[%s1428_s1 + $0x8] sm:$0xff]  ;;  %vm282_vm1 = vcmp.lt.s32.totalorder %v1184_v19, 64  ;;  %vm333_vm12 = vcmp.eq.s32.totalorder %v1184_v19, 0  ;;  %vm378_vm13 = vcmp.eq.s32.totalorder %v1184_v19, 1  ;;  %p954_p1 = scmp.lt.s32.totalorder %s952_s17, %s948_s9 }
  0x1a   : > { %835 = vmatpush.xpose.msk.msra.mxu0 %vm202_vm0, %v200_v1  ;;  %863 = vmatpush.xpose.msk.msra.mxu1 %vm202_vm0, %v200_v1  ;;  %v186_v15 = vld [vmem:[%s1428_s1] sm:$0xff]  ;;  %v185_v17 = vld [vmem:[%s180_s24 + $0x8] sm:$0xff]  ;;  %p951_p13 = pneg %p950_p12 }
  0x1b   : > { %v184_v16 = vld [vmem:[%s180_s24] sm:$0xff]  ;;  %p955_p2 = por %p954_p1, %p953_p0 }
  0x1d   : > { %p956_p3 = pnand %p955_p2, %p951_p13 }
  0x1e   : > { %836 = vmatpush.xpose.msk.msra.mxu0 %vm202_vm0, %v199_v2  ;;  %864 = vmatpush.xpose.msk.msra.mxu1 %vm202_vm0, %v199_v2 }
  0x22   : > { %837 = vmatpush.xpose.msk.msra.mxu0 %vm202_vm0, %v198_v3  ;;  %865 = vmatpush.xpose.msk.msra.mxu1 %vm202_vm0, %v198_v3 }
  0x26   : > { %838 = vmatpush.xpose.msk.msra.mxu0 %vm202_vm0, %v197_v4  ;;  %866 = vmatpush.xpose.msk.msra.mxu1 %vm202_vm0, %v197_v4 }
  0x2a   : > { %839 = vmatpush.xpose.msk.msra.mxu0 %vm202_vm0, %v196_v5  ;;  %867 = vmatpush.xpose.msk.msra.mxu1 %vm202_vm0, %v196_v5 }
  0x2e   : > { %840 = vmatpush.xpose.msk.msra.mxu0 %vm202_vm0, %v195_v6  ;;  %868 = vmatpush.xpose.msk.msra.mxu1 %vm202_vm0, %v195_v6 }
  0x32   : > { %841 = vmatpush.xpose.msk.msra.mxu0 %vm202_vm0, %v194_v7  ;;  %869 = vmatpush.xpose.msk.msra.mxu1 %vm202_vm0, %v194_v7 }
  0x36   : > { %842 = vmatpush.xpose.msk.msra.mxu0 %vm202_vm0, %v193_v8  ;;  %870 = vmatpush.xpose.msk.msra.mxu1 %vm202_vm0, %v193_v8 }
  0x3a   : > { %843 = vmatpush.xpose.msk.msra.mxu0 %vm202_vm0, %v192_v9  ;;  %871 = vmatpush.xpose.msk.msra.mxu1 %vm202_vm0, %v192_v9 }
  0x3e   : > { %844 = vmatpush.xpose.msk.msra.mxu0 %vm202_vm0, %v191_v10  ;;  %872 = vmatpush.xpose.msk.msra.mxu1 %vm202_vm0, %v191_v10 }
  0x42   : > { %845 = vmatpush.xpose.msk.msra.mxu0 %vm202_vm0, %v190_v11  ;;  %873 = vmatpush.xpose.msk.msra.mxu1 %vm202_vm0, %v190_v11 }
  0x46   : > { %846 = vmatpush.xpose.msk.msra.mxu0 %vm202_vm0, %v189_v12  ;;  %874 = vmatpush.xpose.msk.msra.mxu1 %vm202_vm0, %v189_v12 }
  0x4a   : > { %847 = vmatpush.xpose.msk.msra.mxu0 %vm202_vm0, %v188_v13  ;;  %875 = vmatpush.xpose.msk.msra.mxu1 %vm202_vm0, %v188_v13 }
  0x4e   : > { %848 = vmatpush.xpose.msk.msra.mxu0 %vm202_vm0, %v187_v14  ;;  %876 = vmatpush.xpose.msk.msra.mxu1 %vm202_vm0, %v187_v14 }
  0x52   : > { %849 = vmatpush.xpose.msk.msra.mxu0 %vm202_vm0, %v186_v15  ;;  %877 = vmatpush.xpose.msk.msra.mxu1 %vm202_vm0, %v186_v15 }
  0x55   : > { %850 = vmatmul.msk.f32.vlgmr.msra.gmra.mxu0 %vm202_vm0, %v184_v16  ;;  %851 = vmatmul.msk.f32.vlgmr.msra.gmra.mxu1 %vm202_vm0, %v185_v17 }
  0xd2   : > { %v274_v20 = vpop.f32.mrf.mxu0  ;;  %v277_v22 = vpop.f32.mrf.mxu1 }
  0xd3   : > { %v283_v21 = vsel %vm282_vm1, %v274_v20, -1e+30  ;;  %v284_v23 = vsel %vm282_vm1, %v277_v22, -1e+30 }
  0xd4   : > { %285 = vmax.xlane.f32.xlu0 %v283_v21 }
  0xdc   : > { %287 = vmax.xlane.f32.xlu0 %v284_v23 }
 0x147   : > { %v286_v24 = vpop.xlane.xlu0 %285 }
 0x148   : > { %v289_v25 = vsub.f32 %v283_v21, %v286_v24 }
 0x14a   : > { %v291_v26 = vmul.f32 1.442695, %v289_v25 }
 0x14c   : > { %924 = vpow2.f32 %v291_v26 }
 0x14f   : > { %v288_v27 = vpop.xlane.xlu0 %287 }
 0x150   : > { %v290_v28 = vsub.f32 %v284_v23, %v288_v27 }
 0x152   : > { %v925_v29 = vpop.eup %924  ;;  %v293_v30 = vmul.f32 1.442695, %v290_v28 }
 0x153   : > { %v295_v31 = vsel %vm282_vm1, %v925_v29, -1.0 }
 0x154   : > { %926 = vpow2.f32 %v293_v30  ;;  %297 = vmax.xlane.f32.xlu1 %v295_v31 }
 0x15a   : > { %v927_v32 = vpop.eup %926 }
 0x15b   : > { %v296_v33 = vsel %vm282_vm1, %v927_v32, -1.0 }
 0x15c   : > { %299 = vmax.xlane.f32.xlu1 %v296_v33 }
 0x1c7   : > { %v1195_v34 = vpop.xlane.xlu1 %297 }
 0x1c8   : > { %vm301_vm2 = vcmp.eq.f32.partialorder %v295_v31, %v1195_v34 }
 0x1c9   : > { %v303_v35 = vsel %vm301_vm2, %v1184_v19, 128 }
 0x1ca   : > { %v306_v36 = vshra.s32 %v303_v35, 16  ;;  %v305_v42 = vand.u32 65535, %v303_v35 }
 0x1cc   : > { %v308_v37 = vcvt.s32.f32 %v306_v36  ;;  %v307_v44 = vcvt.s32.f32 %v305_v42 }
 0x1ce   : > { %309 = vmin.xlane.f32.xlu2 %v308_v37 }
 0x1cf   : > { %v1199_v38 = vpop.xlane.xlu1 %299 }
 0x1d0   : > { %vm302_vm3 = vcmp.eq.f32.partialorder %v296_v33, %v1199_v38 }
 0x1d1   : > { %v304_v39 = vsel %vm302_vm3, %v1184_v19, 128 }
 0x1d2   : > { %v320_v40 = vshra.s32 %v304_v39, 16  ;;  %v319_v46 = vand.u32 65535, %v304_v39 }
 0x1d4   : > { %v322_v41 = vcvt.s32.f32 %v320_v40  ;;  %v321_v48 = vcvt.s32.f32 %v319_v46 }
 0x1d6   : > { %323 = vmin.xlane.f32.xlu2 %v322_v41 }
 0x241   : > { %v310_v43 = vpop.xlane.xlu2 %309 }
 0x242   : > { %vm311_vm4 = vcmp.eq.f32.partialorder %v308_v37, %v310_v43  ;;  %v316_v50 = vcvt.f32.s32 %v310_v43 }
 0x243   : > { %v312_v45 = vsel %vm311_vm4, %v307_v44, inf  ;;  %vm423_vm4 = vcmp.eq.s32.totalorder %v1184_v19, 2 }
 0x244   : > { %313 = vmin.xlane.f32.xlu0 %v312_v45  ;;  %v317_v52 = vshll.u32 %v316_v50, 16 }
 0x249   : > { %v324_v47 = vpop.xlane.xlu2 %323 }
 0x24a   : > { %vm325_vm5 = vcmp.eq.f32.partialorder %v322_v41, %v324_v47  ;;  %v330_v55 = vcvt.f32.s32 %v324_v47 }
 0x24b   : > { %v326_v49 = vsel %vm325_vm5, %v321_v48, inf }
 0x24c   : > { %327 = vmin.xlane.f32.xlu1 %v326_v49  ;;  %v331_v58 = vshll.u32 %v330_v55, 16 }
 0x2b7   : > { %v314_v51 = vpop.xlane.xlu0 %313 }
 0x2b8   : > { %v315_v53 = vcvt.f32.s32 %v314_v51 }
 0x2ba   : > { %v318_v54 = vadd.s32 %v317_v52, %v315_v53 }
 0x2bc   : > { %vm338_vm6 = vcmp.eq.s32.totalorder %v1184_v19, %v318_v54  ;;  %v336_v20 = vsel %vm333_vm12, %v318_v54, 0 }
 0x2bd   : > { %v340_v56 = vsel %vm338_vm6, -1.0, %v295_v31 }
 0x2be   : > { %342 = vmax.xlane.f32.xlu2 %v340_v56 }
 0x2bf   : > { %v328_v57 = vpop.xlane.xlu1 %327 }
 0x2c0   : > { %v329_v59 = vcvt.f32.s32 %v328_v57 }
 0x2c2   : > { %v332_v60 = vadd.s32 %v331_v58, %v329_v59 }
 0x2c4   : > { %vm339_vm7 = vcmp.eq.s32.totalorder %v1184_v19, %v332_v60  ;;  %v337_v28 = vsel %vm333_vm12, %v332_v60, 0 }
 0x2c5   : > { %v341_v61 = vsel %vm339_vm7, -1.0, %v296_v33 }
 0x2c6   : > { %344 = vmax.xlane.f32.xlu0 %v341_v61 }
 0x331   : > { %v1205_v62 = vpop.xlane.xlu2 %342 }
 0x332   : > { %vm346_vm8 = vcmp.eq.f32.partialorder %v340_v56, %v1205_v62 }
 0x333   : > { %v348_v63 = vsel %vm346_vm8, %v1184_v19, 128 }
 0x334   : > { %v351_v0 = vshra.s32 %v348_v63, 16  ;;  %v350_v6 = vand.u32 65535, %v348_v63 }
 0x336   : > { %v353_v1 = vcvt.s32.f32 %v351_v0  ;;  %v352_v8 = vcvt.s32.f32 %v350_v6 }
 0x338   : > { %354 = vmin.xlane.f32.xlu1 %v353_v1 }
 0x339   : > { %v1209_v2 = vpop.xlane.xlu0 %344 }
 0x33a   : > { %vm347_vm9 = vcmp.eq.f32.partialorder %v341_v61, %v1209_v2 }
 0x33b   : > { %v349_v3 = vsel %vm347_vm9, %v1184_v19, 128 }
 0x33c   : > { %v365_v4 = vshra.s32 %v349_v3, 16  ;;  %v364_v10 = vand.u32 65535, %v349_v3 }
 0x33e   : > { %v367_v5 = vcvt.s32.f32 %v365_v4  ;;  %v366_v12 = vcvt.s32.f32 %v364_v10 }
 0x340   : > { %368 = vmin.xlane.f32.xlu2 %v367_v5 }
 0x3ab   : > { %v355_v7 = vpop.xlane.xlu1 %354 }
 0x3ac   : > { %vm356_vm10 = vcmp.eq.f32.partialorder %v353_v1, %v355_v7  ;;  %v361_v14 = vcvt.f32.s32 %v355_v7 }
 0x3ad   : > { %v357_v9 = vsel %vm356_vm10, %v352_v8, inf }
 0x3ae   : > { %358 = vmin.xlane.f32.xlu0 %v357_v9  ;;  %v362_v16 = vshll.u32 %v361_v14, 16 }
 0x3b3   : > { %v369_v11 = vpop.xlane.xlu2 %368 }
 0x3b4   : > { %vm370_vm11 = vcmp.eq.f32.partialorder %v367_v5, %v369_v11  ;;  %v375_v21 = vcvt.f32.s32 %v369_v11 }
 0x3b5   : > { %v371_v13 = vsel %vm370_vm11, %v366_v12, inf  ;;  %vm468_vm11 = vcmp.eq.s32.totalorder %v1184_v19, 3 }
 0x3b6   : > { %372 = vmin.xlane.f32.xlu1 %v371_v13  ;;  %v376_v25 = vshll.u32 %v375_v21, 16 }
 0x421   : > { %v359_v15 = vpop.xlane.xlu0 %358 }
 0x422   : > { %v360_v17 = vcvt.f32.s32 %v359_v15 }
 0x424   : > { %v363_v18 = vadd.s32 %v362_v16, %v360_v17 }
 0x426   : > { %v381_v22 = vsel %vm378_vm13, %v363_v18, %v336_v20  ;;  %vm383_vm14 = vcmp.eq.s32.totalorder %v1184_v19, %v363_v18 }
 0x427   : > { %v385_v23 = vsel %vm383_vm14, -1.0, %v340_v56 }
 0x428   : > { %387 = vmax.xlane.f32.xlu2 %v385_v23 }
 0x429   : > { %v373_v24 = vpop.xlane.xlu1 %372 }
 0x42a   : > { %v374_v26 = vcvt.f32.s32 %v373_v24 }
 0x42c   : > { %v377_v27 = vadd.s32 %v376_v25, %v374_v26 }
 0x42e   : > { %v382_v29 = vsel %vm378_vm13, %v377_v27, %v337_v28  ;;  %vm384_vm15 = vcmp.eq.s32.totalorder %v1184_v19, %v377_v27 }
 0x42f   : > { %v386_v30 = vsel %vm384_vm15, -1.0, %v341_v61 }
 0x430   : > { %389 = vmax.xlane.f32.xlu0 %v386_v30 }
 0x49b   : > { %v1225_v31 = vpop.xlane.xlu2 %387 }
 0x49c   : > { %vm391_vm0 = vcmp.eq.f32.partialorder %v385_v23, %v1225_v31 }
 0x49d   : > { %v393_v32 = vsel %vm391_vm0, %v1184_v19, 128 }
 0x49e   : > { %v396_v33 = vshra.s32 %v393_v32, 16  ;;  %v395_v41 = vand.u32 65535, %v393_v32 }
 0x4a0   : > { %v398_v35 = vcvt.s32.f32 %v396_v33  ;;  %v397_v43 = vcvt.s32.f32 %v395_v41 }
 0x4a2   : > { %399 = vmin.xlane.f32.xlu1 %v398_v35 }
 0x4a3   : > { %v1229_v36 = vpop.xlane.xlu0 %389 }
 0x4a4   : > { %vm392_vm1 = vcmp.eq.f32.partialorder %v386_v30, %v1229_v36 }
 0x4a5   : > { %v394_v37 = vsel %vm392_vm1, %v1184_v19, 128 }
 0x4a6   : > { %v410_v39 = vshra.s32 %v394_v37, 16  ;;  %v409_v45 = vand.u32 65535, %v394_v37 }
 0x4a8   : > { %v412_v40 = vcvt.s32.f32 %v410_v39  ;;  %v411_v47 = vcvt.s32.f32 %v409_v45 }
 0x4aa   : > { %413 = vmin.xlane.f32.xlu2 %v412_v40 }
 0x515   : > { %v400_v42 = vpop.xlane.xlu1 %399 }
 0x516   : > { %vm401_vm2 = vcmp.eq.f32.partialorder %v398_v35, %v400_v42  ;;  %v406_v49 = vcvt.f32.s32 %v400_v42 }
 0x517   : > { %v402_v44 = vsel %vm401_vm2, %v397_v43, inf }
 0x518   : > { %403 = vmin.xlane.f32.xlu0 %v402_v44  ;;  %v407_v51 = vshll.u32 %v406_v49, 16 }
 0x51d   : > { %v414_v46 = vpop.xlane.xlu2 %413 }
 0x51e   : > { %vm415_vm3 = vcmp.eq.f32.partialorder %v412_v40, %v414_v46  ;;  %v420_v54 = vcvt.f32.s32 %v414_v46 }
 0x51f   : > { %v416_v48 = vsel %vm415_vm3, %v411_v47, inf }
 0x520   : > { %417 = vmin.xlane.f32.xlu1 %v416_v48  ;;  %v421_v58 = vshll.u32 %v420_v54, 16 }
 0x58b   : > { %v404_v50 = vpop.xlane.xlu0 %403 }
 0x58c   : > { %v405_v52 = vcvt.f32.s32 %v404_v50 }
 0x58e   : > { %v408_v53 = vadd.s32 %v407_v51, %v405_v52 }
 0x590   : > { %v426_v55 = vsel %vm423_vm4, %v408_v53, %v381_v22  ;;  %vm428_vm5 = vcmp.eq.s32.totalorder %v1184_v19, %v408_v53 }
 0x591   : > { %v430_v56 = vsel %vm428_vm5, -1.0, %v385_v23  ;;  %vm513_vm5 = vcmp.eq.s32.totalorder %v1184_v19, 4 }
 0x592   : > { %432 = vmax.xlane.f32.xlu2 %v430_v56 }
 0x593   : > { %v418_v57 = vpop.xlane.xlu1 %417 }
 0x594   : > { %v419_v59 = vcvt.f32.s32 %v418_v57 }
 0x596   : > { %v422_v60 = vadd.s32 %v421_v58, %v419_v59 }
 0x598   : > { %v427_v61 = vsel %vm423_vm4, %v422_v60, %v382_v29  ;;  %vm429_vm6 = vcmp.eq.s32.totalorder %v1184_v19, %v422_v60 }
 0x599   : > { %v431_v63 = vsel %vm429_vm6, -1.0, %v386_v30 }
 0x59a   : > { %434 = vmax.xlane.f32.xlu0 %v431_v63 }
 0x605   : > { %v1240_v0 = vpop.xlane.xlu2 %432 }
 0x606   : > { %vm436_vm7 = vcmp.eq.f32.partialorder %v430_v56, %v1240_v0 }
 0x607   : > { %v438_v1 = vsel %vm436_vm7, %v1184_v19, 128 }
 0x608   : > { %v441_v3 = vshra.s32 %v438_v1, 16  ;;  %v440_v9 = vand.u32 65535, %v438_v1 }
 0x60a   : > { %v443_v4 = vcvt.s32.f32 %v441_v3  ;;  %v442_v11 = vcvt.s32.f32 %v440_v9 }
 0x60c   : > { %444 = vmin.xlane.f32.xlu1 %v443_v4 }
 0x60d   : > { %v1244_v5 = vpop.xlane.xlu0 %434 }
 0x60e   : > { %vm437_vm8 = vcmp.eq.f32.partialorder %v431_v63, %v1244_v5 }
 0x60f   : > { %v439_v6 = vsel %vm437_vm8, %v1184_v19, 128 }
 0x610   : > { %v455_v7 = vshra.s32 %v439_v6, 16  ;;  %v454_v13 = vand.u32 65535, %v439_v6 }
 0x612   : > { %v457_v8 = vcvt.s32.f32 %v455_v7  ;;  %v456_v15 = vcvt.s32.f32 %v454_v13 }
 0x614   : > { %458 = vmin.xlane.f32.xlu2 %v457_v8 }
 0x67f   : > { %v445_v10 = vpop.xlane.xlu1 %444 }
 0x680   : > { %vm446_vm9 = vcmp.eq.f32.partialorder %v443_v4, %v445_v10  ;;  %v451_v17 = vcvt.f32.s32 %v445_v10 }
 0x681   : > { %v447_v12 = vsel %vm446_vm9, %v442_v11, inf }
 0x682   : > { %448 = vmin.xlane.f32.xlu0 %v447_v12  ;;  %v452_v20 = vshll.u32 %v451_v17, 16 }
 0x687   : > { %v459_v14 = vpop.xlane.xlu2 %458 }
 0x688   : > { %vm460_vm10 = vcmp.eq.f32.partialorder %v457_v8, %v459_v14  ;;  %v465_v23 = vcvt.f32.s32 %v459_v14 }
 0x689   : > { %v461_v16 = vsel %vm460_vm10, %v456_v15, inf }
 0x68a   : > { %462 = vmin.xlane.f32.xlu1 %v461_v16  ;;  %v466_v27 = vshll.u32 %v465_v23, 16 }
 0x6f5   : > { %v449_v18 = vpop.xlane.xlu0 %448 }
 0x6f6   : > { %v450_v21 = vcvt.f32.s32 %v449_v18 }
 0x6f8   : > { %v453_v22 = vadd.s32 %v452_v20, %v450_v21 }
 0x6fa   : > { %v471_v24 = vsel %vm468_vm11, %v453_v22, %v426_v55  ;;  %vm473_vm14 = vcmp.eq.s32.totalorder %v1184_v19, %v453_v22 }
 0x6fb   : > { %v475_v25 = vsel %vm473_vm14, -1.0, %v430_v56 }
 0x6fc   : > { %477 = vmax.xlane.f32.xlu2 %v475_v25 }
 0x6fd   : > { %v463_v26 = vpop.xlane.xlu1 %462 }
 0x6fe   : > { %v464_v28 = vcvt.f32.s32 %v463_v26 }
 0x700   : > { %v467_v29 = vadd.s32 %v466_v27, %v464_v28 }
 0x702   : > { %v472_v30 = vsel %vm468_vm11, %v467_v29, %v427_v61  ;;  %vm474_vm15 = vcmp.eq.s32.totalorder %v1184_v19, %v467_v29 }
 0x703   : > { %v476_v32 = vsel %vm474_vm15, -1.0, %v431_v63  ;;  %vm558_vm15 = vcmp.eq.s32.totalorder %v1184_v19, 5 }
 0x704   : > { %479 = vmax.xlane.f32.xlu0 %v476_v32 }
 0x76f   : > { %v1255_v33 = vpop.xlane.xlu2 %477 }
 0x770   : > { %vm481_vm0 = vcmp.eq.f32.partialorder %v475_v25, %v1255_v33 }
 0x771   : > { %v483_v35 = vsel %vm481_vm0, %v1184_v19, 128 }
 0x772   : > { %v486_v37 = vshra.s32 %v483_v35, 16  ;;  %v485_v44 = vand.u32 65535, %v483_v35 }
 0x774   : > { %v488_v39 = vcvt.s32.f32 %v486_v37  ;;  %v487_v46 = vcvt.s32.f32 %v485_v44 }
 0x776   : > { %489 = vmin.xlane.f32.xlu1 %v488_v39 }
 0x777   : > { %v1259_v40 = vpop.xlane.xlu0 %479 }
 0x778   : > { %vm482_vm1 = vcmp.eq.f32.partialorder %v476_v32, %v1259_v40 }
 0x779   : > { %v484_v41 = vsel %vm482_vm1, %v1184_v19, 128 }
 0x77a   : > { %v500_v42 = vshra.s32 %v484_v41, 16  ;;  %v499_v48 = vand.u32 65535, %v484_v41 }
 0x77c   : > { %v502_v43 = vcvt.s32.f32 %v500_v42  ;;  %v501_v50 = vcvt.s32.f32 %v499_v48 }
 0x77e   : > { %503 = vmin.xlane.f32.xlu2 %v502_v43 }
 0x7e9   : > { %v490_v45 = vpop.xlane.xlu1 %489 }
 0x7ea   : > { %vm491_vm2 = vcmp.eq.f32.partialorder %v488_v39, %v490_v45  ;;  %v496_v52 = vcvt.f32.s32 %v490_v45 }
 0x7eb   : > { %v492_v47 = vsel %vm491_vm2, %v487_v46, inf }
 0x7ec   : > { %493 = vmin.xlane.f32.xlu0 %v492_v47  ;;  %v497_v54 = vshll.u32 %v496_v52, 16 }
 0x7f1   : > { %v504_v49 = vpop.xlane.xlu2 %503 }
 0x7f2   : > { %vm505_vm3 = vcmp.eq.f32.partialorder %v502_v43, %v504_v49  ;;  %v510_v57 = vcvt.f32.s32 %v504_v49 }
 0x7f3   : > { %v506_v51 = vsel %vm505_vm3, %v501_v50, inf }
 0x7f4   : > { %507 = vmin.xlane.f32.xlu1 %v506_v51  ;;  %v511_v61 = vshll.u32 %v510_v57, 16 }
 0x85f   : > { %v494_v53 = vpop.xlane.xlu0 %493 }
 0x860   : > { %v495_v55 = vcvt.f32.s32 %v494_v53 }
 0x862   : > { %v498_v56 = vadd.s32 %v497_v54, %v495_v55 }
 0x864   : > { %v516_v58 = vsel %vm513_vm5, %v498_v56, %v471_v24  ;;  %vm518_vm6 = vcmp.eq.s32.totalorder %v1184_v19, %v498_v56 }
 0x865   : > { %v520_v59 = vsel %vm518_vm6, -1.0, %v475_v25 }
 0x866   : > { %522 = vmax.xlane.f32.xlu2 %v520_v59 }
 0x867   : > { %v508_v60 = vpop.xlane.xlu1 %507 }
 0x868   : > { %v509_v63 = vcvt.f32.s32 %v508_v60 }
 0x86a   : > { %v512_v1 = vadd.s32 %v511_v61, %v509_v63 }
 0x86c   : > { %v517_v3 = vsel %vm513_vm5, %v512_v1, %v472_v30  ;;  %vm519_vm7 = vcmp.eq.s32.totalorder %v1184_v19, %v512_v1 }
 0x86d   : > { %v521_v4 = vsel %vm519_vm7, -1.0, %v476_v32 }
 0x86e   : > { %524 = vmax.xlane.f32.xlu0 %v521_v4 }
 0x8d9   : > { %v1270_v6 = vpop.xlane.xlu2 %522 }
 0x8da   : > { %vm526_vm8 = vcmp.eq.f32.partialorder %v520_v59, %v1270_v6 }
 0x8db   : > { %v528_v7 = vsel %vm526_vm8, %v1184_v19, 128  ;;  %vm603_vm8 = vcmp.eq.s32.totalorder %v1184_v19, 6 }
 0x8dc   : > { %v531_v8 = vshra.s32 %v528_v7, 16  ;;  %v530_v14 = vand.u32 65535, %v528_v7 }
 0x8de   : > { %v533_v9 = vcvt.s32.f32 %v531_v8  ;;  %v532_v16 = vcvt.s32.f32 %v530_v14 }
 0x8e0   : > { %534 = vmin.xlane.f32.xlu1 %v533_v9 }
 0x8e1   : > { %v1274_v10 = vpop.xlane.xlu0 %524 }
 0x8e2   : > { %vm527_vm9 = vcmp.eq.f32.partialorder %v521_v4, %v1274_v10 }
 0x8e3   : > { %v529_v11 = vsel %vm527_vm9, %v1184_v19, 128 }
 0x8e4   : > { %v545_v12 = vshra.s32 %v529_v11, 16  ;;  %v544_v18 = vand.u32 65535, %v529_v11 }
 0x8e6   : > { %v547_v13 = vcvt.s32.f32 %v545_v12  ;;  %v546_v21 = vcvt.s32.f32 %v544_v18 }
 0x8e8   : > { %548 = vmin.xlane.f32.xlu2 %v547_v13 }
 0x953   : > { %v535_v15 = vpop.xlane.xlu1 %534 }
 0x954   : > { %vm536_vm10 = vcmp.eq.f32.partialorder %v533_v9, %v535_v15  ;;  %v541_v23 = vcvt.f32.s32 %v535_v15  ;;  %v334_v15 = vsel %vm333_vm12, %v1195_v34, 0.0 }
 0x955   : > { %v537_v17 = vsel %vm536_vm10, %v532_v16, inf  ;;  %v379_v16 = vsel %vm378_vm13, %v1205_v62, %v334_v15 }
 0x956   : > { %538 = vmin.xlane.f32.xlu0 %v537_v17  ;;  %v542_v25 = vshll.u32 %v541_v23, 16  ;;  %v424_v17 = vsel %vm423_vm4, %v1225_v31, %v379_v16 }
 0x957   : > { %v469_v18 = vsel %vm468_vm11, %v1240_v0, %v424_v17 }
 0x95b   : > { %v549_v20 = vpop.xlane.xlu2 %548 }
 0x95c   : > { %vm550_vm14 = vcmp.eq.f32.partialorder %v547_v13, %v549_v20  ;;  %v555_v28 = vcvt.f32.s32 %v549_v20  ;;  %v514_v20 = vsel %vm513_vm5, %v1255_v33, %v469_v18  ;;  %v335_v33 = vsel %vm333_vm12, %v1199_v38, 0.0 }
 0x95d   : > { %v551_v22 = vsel %vm550_vm14, %v546_v21, inf  ;;  %vm648_vm14 = vcmp.eq.s32.totalorder %v1184_v19, 7  ;;  %v559_v34 = vsel %vm558_vm15, %v1270_v6, %v514_v20  ;;  %v380_v6 = vsel %vm378_vm13, %v1209_v2, %v335_v33 }
 0x95e   : > { %552 = vmin.xlane.f32.xlu1 %v551_v22  ;;  %v556_v35 = vshll.u32 %v555_v28, 16 }
 0x9c9   : > { %v539_v24 = vpop.xlane.xlu0 %538 }
 0x9ca   : > { %v540_v26 = vcvt.f32.s32 %v539_v24 }
 0x9cc   : > { %v543_v27 = vadd.s32 %v542_v25, %v540_v26  ;;  %v425_v25 = vsel %vm423_vm4, %v1229_v36, %v380_v6 }
 0x9cd   : > { %v470_v26 = vsel %vm468_vm11, %v1244_v5, %v425_v25 }
 0x9ce   : > { %v561_v29 = vsel %vm558_vm15, %v543_v27, %v516_v58  ;;  %vm563_vm0 = vcmp.eq.s32.totalorder %v1184_v19, %v543_v27  ;;  %v515_v38 = vsel %vm513_vm5, %v1259_v40, %v470_v26 }
 0x9cf   : > { %v565_v30 = vsel %vm563_vm0, -1.0, %v520_v59  ;;  %v560_v2 = vsel %vm558_vm15, %v1274_v10, %v515_v38 }
 0x9d0   : > { %567 = vmax.xlane.f32.xlu2 %v565_v30 }
 0x9d1   : > { %v553_v32 = vpop.xlane.xlu1 %552 }
 0x9d2   : > { %v554_v37 = vcvt.f32.s32 %v553_v32 }
 0x9d4   : > { %v557_v39 = vadd.s32 %v556_v35, %v554_v37 }
 0x9d6   : > { %v562_v41 = vsel %vm558_vm15, %v557_v39, %v517_v3  ;;  %vm564_vm1 = vcmp.eq.s32.totalorder %v1184_v19, %v557_v39 }
 0x9d7   : > { %v566_v42 = vsel %vm564_vm1, -1.0, %v521_v4 }
 0x9d8   : > { %569 = vmax.xlane.f32.xlu0 %v566_v42 }
 0xa43   : > { %v568_v43 = vpop.xlane.xlu2 %567 }
 0xa44   : > { %vm571_vm2 = vcmp.eq.f32.partialorder %v565_v30, %v568_v43  ;;  %v604_v62 = vsel %vm603_vm8, %v568_v43, %v559_v34 }
 0xa45   : > { %v573_v44 = vsel %vm571_vm2, %v1184_v19, 128 }
 0xa46   : > { %v576_v45 = vshra.s32 %v573_v44, 16  ;;  %v575_v51 = vand.u32 65535, %v573_v44 }
 0xa48   : > { %v578_v46 = vcvt.s32.f32 %v576_v45  ;;  %v577_v53 = vcvt.s32.f32 %v575_v51 }
 0xa4a   : > { %579 = vmin.xlane.f32.xlu1 %v578_v46 }
 0xa4b   : > { %v1286_v47 = vpop.xlane.xlu0 %569 }
 0xa4c   : > { %vm572_vm3 = vcmp.eq.f32.partialorder %v566_v42, %v1286_v47  ;;  %v605_v36 = vsel %vm603_vm8, %v1286_v47, %v560_v2 }
 0xa4d   : > { %v574_v48 = vsel %vm572_vm3, %v1184_v19, 128 }
 0xa4e   : > { %v590_v49 = vshra.s32 %v574_v48, 16  ;;  %v589_v55 = vand.u32 65535, %v574_v48 }
 0xa50   : > { %v592_v50 = vcvt.s32.f32 %v590_v49  ;;  %v591_v57 = vcvt.s32.f32 %v589_v55 }
 0xa52   : > { %593 = vmin.xlane.f32.xlu2 %v592_v50 }
 0xabd   : > { %v580_v52 = vpop.xlane.xlu1 %579 }
 0xabe   : > { %vm581_vm6 = vcmp.eq.f32.partialorder %v578_v46, %v580_v52  ;;  %v586_v59 = vcvt.f32.s32 %v580_v52 }
 0xabf   : > { %v582_v54 = vsel %vm581_vm6, %v577_v53, inf }
 0xac0   : > { %583 = vmin.xlane.f32.xlu0 %v582_v54  ;;  %v587_v61 = vshll.u32 %v586_v59, 16 }
 0xac5   : > { %v594_v56 = vpop.xlane.xlu2 %593 }
 0xac6   : > { %vm595_vm7 = vcmp.eq.f32.partialorder %v592_v50, %v594_v56  ;;  %v600_v3 = vcvt.f32.s32 %v594_v56 }
 0xac7   : > { %v596_v58 = vsel %vm595_vm7, %v591_v57, inf }
 0xac8   : > { %597 = vmin.xlane.f32.xlu1 %v596_v58  ;;  %v601_v9 = vshll.u32 %v600_v3, 16 }
 0xb33   : > { %v584_v60 = vpop.xlane.xlu0 %583 }
 0xb34   : > { %v585_v63 = vcvt.f32.s32 %v584_v60 }
 0xb36   : > { %v588_v1 = vadd.s32 %v587_v61, %v585_v63 }
 0xb38   : > { %v1293_v4 = vsel %vm603_vm8, %v588_v1, %v561_v29  ;;  %vm608_vm9 = vcmp.eq.s32.totalorder %v1184_v19, %v588_v1 }
 0xb39   : > { %v610_v7 = vsel %vm608_vm9, -1.0, %v565_v30 }
 0xb3a   : > { %612 = vmax.xlane.f32.xlu2 %v610_v7 }
 0xb3b   : > { %v598_v8 = vpop.xlane.xlu1 %597 }
 0xb3c   : > { %v599_v11 = vcvt.f32.s32 %v598_v8 }
 0xb3e   : > { %v602_v12 = vadd.s32 %v601_v9, %v599_v11 }
 0xb40   : > { %v1298_v13 = vsel %vm603_vm8, %v602_v12, %v562_v41  ;;  %vm609_vm10 = vcmp.eq.s32.totalorder %v1184_v19, %v602_v12 }
 0xb41   : > { %v611_v14 = vsel %vm609_vm10, -1.0, %v566_v42 }
 0xb42   : > { %614 = vmax.xlane.f32.xlu0 %v611_v14 }
 0xbad   : > { %v613_v21 = vpop.xlane.xlu2 %612 }
 0xbae   : > { %vm616_vm0 = vcmp.eq.f32.partialorder %v610_v7, %v613_v21  ;;  %v649_v31 = vsel %vm648_vm14, %v613_v21, %v604_v62 }
 0xbaf   : > { %v618_v0 = vsel %vm616_vm0, %v1184_v19, 128  ;;  %653 = vadd.xlane.f32.xlu0 %v649_v31 }
 0xbb0   : > { %v621_v22 = vshra.s32 %v618_v0, 16  ;;  %v620_v35 = vand.u32 65535, %v618_v0 }
 0xbb2   : > { %v623_v23 = vcvt.s32.f32 %v621_v22  ;;  %v622_v37 = vcvt.s32.f32 %v620_v35 }
 0xbb4   : > { %624 = vmin.xlane.f32.xlu1 %v623_v23 }
 0xbb5   : > { %v615_v24 = vpop.xlane.xlu0 %614 }
 0xbb6   : > { %vm617_vm1 = vcmp.eq.f32.partialorder %v611_v14, %v615_v24  ;;  %v650_v30 = vsel %vm648_vm14, %v615_v24, %v605_v36 }
 0xbb7   : > { %v619_v27 = vsel %vm617_vm1, %v1184_v19, 128 }
 0xbb8   : > { %v635_v28 = vshra.s32 %v619_v27, 16  ;;  %v634_v41 = vand.u32 65535, %v619_v27 }
 0xbba   : > { %v637_v29 = vcvt.s32.f32 %v635_v28  ;;  %v636_v48 = vcvt.s32.f32 %v634_v41 }
 0xbbc   : > { %655 = vadd.xlane.f32.xlu1 %v650_v30  ;;  %638 = vmin.xlane.f32.xlu2 %v637_v29 }
 0xc22   : > { %v654_v5 = vpop.xlane.xlu0 %653 }
 0xc23   : > { %v657_v32 = vadd.f32 1e-20, %v654_v5 }
 0xc25   : > { %928 = vrcp.f32 %v657_v32  ;;  %v668_v44 = vand.u32 2147483647, %v657_v32  ;;  %v670_v45 = vand.u32 2147483648, %v657_v32  ;;  %vm664_vm11 = vweird.f32 %v657_v32 }
 0xc27   : > { %v1349_v40 = vpop.xlane.xlu1 %624  ;;  %v671_v53 = vor.u32 1.1754944e-38, %v670_v45  ;;  %vm669_vm15 = vcmp.eq.f32.partialorder %v668_v44, 8.507059e+37 }
 0xc28   : > { %vm626_vm12 = vcmp.eq.f32.partialorder %v623_v23, %v1349_v40 }
 0xc29   : > { %v627_v10 = vsel %vm626_vm12, %v622_v37, inf }
 0xc2a   : > { %628 = vmin.xlane.f32.xlu2 %v627_v10 }
 0xc2b   : > { %v929_v39 = vpop.eup %928 }
 0xc2c   : > { %v660_v42 = vmul.f32 %v929_v39, %v657_v32  ;;  %vm665_vm13 = vweird.f32 %v929_v39 }
 0xc2d   : > { %vm666_vm5 = vmor %vm664_vm11, %vm665_vm13 }
 0xc2e   : > { %v661_v43 = vsub.f32 1.0, %v660_v42 }
 0xc2f   : > { %v656_v46 = vpop.xlane.xlu1 %655  ;;  %v1352_v47 = vpop.xlane.xlu2 %638 }
 0xc30   : > { %v662_v49 = vmul.f32 %v929_v39, %v661_v43  ;;  %v658_v50 = vadd.f32 1e-20, %v656_v46  ;;  %vm640_vm4 = vcmp.eq.f32.partialorder %v637_v29, %v1352_v47 }
 0xc31   : > { %v641_v51 = vsel %vm640_vm4, %v636_v48, inf }
 0xc32   : > { %v663_v52 = vadd.f32 %v929_v39, %v662_v49  ;;  %930 = vrcp.f32 %v658_v50  ;;  %642 = vmin.xlane.f32.xlu0 %v641_v51  ;;  %v685_v60 = vand.u32 2147483648, %v658_v50  ;;  %v683_v63 = vand.u32 2147483647, %v658_v50 }
 0xc33   : > { %vm679_vm3 = vweird.f32 %v658_v50 }
 0xc34   : > { %v667_v54 = vsel %vm666_vm5, %v929_v39, %v663_v52  ;;  %v686_v3 = vor.u32 1.1754944e-38, %v685_v60  ;;  %vm684_vm7 = vcmp.eq.f32.partialorder %v683_v63, 8.507059e+37 }
 0xc35   : > { %v672_v55 = vsel %vm669_vm15, %v671_v53, %v667_v54 }
 0xc36   : > { %v673_v56 = vmul.f32 %v672_v55, %v649_v31 }
 0xc38   : > { %v931_v57 = vpop.eup %930  ;;  %691 = vst [vmem:[%s175_s27] sm:$0xff] %v673_v56 }
 0xc39   : > { %v675_v58 = vmul.f32 %v931_v57, %v658_v50  ;;  %vm680_vm2 = vweird.f32 %v931_v57 }
 0xc3a   : > { %vm681_vm6 = vmor %vm679_vm3, %vm680_vm2 }
 0xc3b   : > { %v676_v59 = vsub.f32 1.0, %v675_v58 }
 0xc3d   : > { %v677_v61 = vmul.f32 %v931_v57, %v676_v59 }
 0xc3f   : > { %v678_v1 = vadd.f32 %v931_v57, %v677_v61 }
 0xc41   : > { %v682_v7 = vsel %vm681_vm6, %v931_v57, %v678_v1 }
 0xc42   : > { %v687_v8 = vsel %vm684_vm7, %v686_v3, %v682_v7 }
 0xc43   : > { %v688_v9 = vmul.f32 %v687_v8, %v650_v30 }
 0xc45   : > { %692 = vst [vmem:[%s175_s27 + $0x8] sm:$0xff] %v688_v9 }
 0xc46   : > { %959 = shalt.err (!%p956_p3)
}
 0xc47   : > { %s1028_s24 = smov 128   ;;  %s1029_s27 = smov 8   ;;  %v631_v11 = vcvt.f32.s32 %v1349_v40  ;;  %v645_v17 = vcvt.f32.s32 %v1352_v47 }
 0xc48   : > { %879 = dma.vmem_to_hbm [thread:$0]  (%p1088_p5), %s729_s5, 256, %s731_s6, %s699_s7, %s1028_s24, %s1028_s24, %s1029_s27  }
 0xc49   : > { %v632_v14 = vshll.u32 %v631_v11, 16  ;;  %s168_s29 = scalar_lea.vmem [#allocation2], %s830_s26  ;;  %s710_s5 = scalar_lea.hbm %s1429_s2, %s860_s28  ;;  %v646_v34 = vshll.u32 %v645_v17, 16 }
 0xc4a   : > { %s711_s6 = sshll.u32 %s168_s29, 4  ;;  %s713_s7 = sshll.u32 %s710_s5, 4  ;;  %s712_s6 = int_to_ptr.vmem [resolvable:$true] %s711_s6  ;;  %s714_s7 = int_to_ptr.hbm [resolvable:$true] %s713_s7 }
 0xc4b   : > { %s694_s26 = scalar_lea.sflag [#allocation3], %s1355_s25  ;;  %s974_s16 = sshra.s32 %s714_s7, 4  ;;  %s975_s16 = int_to_ptr.hbm [resolvable:$true] %s974_s16 }
 0xc4c   : > { %s976_s8 = scalar_lea.hbm %s975_s16, 16  ;;  %s980_s10 = scalar_lea.hbm %s1429_s2, 32 }
 0xc4d   : > { %p977_p4 = scmp.ne.s32.totalorder %s975_s16, %s976_s8  ;;  %p981_p9 = scmp.lt.s32.totalorder %s975_s16, %s1429_s2 }
 0xc4e   : > { %p982_p10 = scmp.lt.s32.totalorder %s980_s10, %s976_s8 }
 0xc4f   : > { %p978_p7 = pnand %p977_p4, %p1088_p5 }
 0xc50   : > { %p983_p11 = por %p982_p10, %p981_p9 }
 0xc51   : > { %p979_p8 = pneg %p978_p7 }
 0xc53   : > { %p984_p12 = pnand %p983_p11, %p979_p8 }
 0xc9d   : > { %v629_v12 = vpop.xlane.xlu2 %628 }
 0xc9e   : > { %v630_v15 = vcvt.f32.s32 %v629_v12 }
 0xca0   : > { %v633_v16 = vadd.s32 %v632_v14, %v630_v15 }
 0xca2   : > { %v651_v18 = vsel %vm648_vm14, %v633_v16, %v1293_v4 }
 0xca3   : > { %689 = vst [vmem:[%s168_s29] sm:$0xff] %v651_v18 }
 0xca5   : > { %v643_v20 = vpop.xlane.xlu0 %642 }
 0xca6   : > { %v644_v62 = vcvt.f32.s32 %v643_v20 }
 0xca8   : > { %v647_v21 = vadd.s32 %v646_v34, %v644_v62 }
 0xcaa   : > { %v652_v4 = vsel %vm648_vm14, %v647_v21, %v1298_v13 }
 0xcab   : > { %690 = vst [vmem:[%s168_s29 + $0x8] sm:$0xff] %v652_v4 }
 0xcac   : > { %987 = shalt.err (!%p984_p12)
}
 0xcad   : > { %878 = dma.vmem_to_hbm [thread:$0]  (%p1088_p5), %s712_s6, 256, %s714_s7, %s694_s26, %s1028_s24, %s1028_s24, %s1029_s27  }
 0xcae PF: > { %p889_p13 = scmp.ge.s32.totalorder %s1026_s15, 2  ;;  %s745_s25 = sand.u32 1, %s1014_s12  }
 0xcaf   : > { %s746_s19 = scalar_lea.sflag [#allocation3], %s745_s25 }
 0xcb0   : > { %p883_p0 = pnand %p889_p13, %p1092_p6 }
 0xcb2   : > { %p884_p1 = pneg %p883_p0 }
 0xcb4   : > { %1005 = dma.done.wait (%p884_p1), %s746_s19, 256  }
 0xcb5   : > { %1007 = vsyncadd (%p884_p1), %s746_s19, 4294967040  ;;  %s756_s20 = scalar_lea.sflag [#allocation5], %s745_s25 }
 0xcb6   : > { %1009 = dma.done.wait (%p884_p1), %s756_s20, 256  }
 0xcb7   : > { %1011 = vsyncadd (%p884_p1), %s756_s20, 4294967040  ;;  %p17_p5 = scmp.ge.s32.totalorder %s1075_s18, 4   ;;  %s1433_s12 = smov %s1018_s13 }
 0xcb8   : > { %s1434_s13 = smov %s1022_s14  ;;  %s1435_s14 = smov %s1086_s21 }
 0xcb9   : > { %s1436_s15 = smov %s1075_s18  ;;  %19 = sbr.rel (!%p17_p5) target bundleno = 5 (0x5), region = 80 }
 0xcbe   :  { %762 = vsyncpa [#allocation3], 1 }
 0xcbf   :  { %764 = vsyncpa [#allocation3 + $0x1], 1 }
 0xcc0   :  { %765 = vsyncpa [#allocation5], 1 }
 0xcc1   :  { %767 = vsyncpa [#allocation5 + $0x1], 1 }

</bundles_post_ra>
